<compile_context>
chip_gen: v7x
topology: tpu7x:2x2x1
jax: 0.10.0
libtpu: 0.0.40
codegen_flags: <defaults>
</compile_context>

<pallas_src>
import functools

import jax
import jax.numpy as jnp
from jax.experimental import pallas as pl
from jax.experimental.pallas import tpu as pltpu


def _round_up(v, m):
    return (v + m - 1) // m * m


def _vmem_budget_and_limit():
    """(per-buffer tile budget bytes, scoped-VMEM limit bytes), by TPU gen."""
    cap = 128 << 20
    try:
        info = pltpu.get_tpu_info()
        cap = getattr(info, "vmem_capacity_bytes", cap) or cap
    except Exception:
        pass
    if cap <= (64 << 20):            # v7x-class: 64 MiB physical per core
        return 4 << 20, 32 << 20
    return 8 << 20, 64 << 20         # v5e / v6e: 128 MiB physical


def _pick_tiles(r, hw, itemsize, tile_budget_bytes):
    """Pick (row_tile, lane_tile) for an (r, hw) layout.

    Rows: multiple of the dtype sublane quantum (8/16/32 for 4/2/1-byte
    dtypes), sized so there are >= 2 row blocks whenever r allows it
    (megacore on the 'parallel' row axis), capped at 256.
    Lanes: full extent if it fits the per-buffer budget, else a multiple of
    128 within the budget.  Ragged tails are handled with cdiv grids plus
    in-kernel lane masking / Pallas masked boundary stores.
    """
    q = max(8, 32 // itemsize)       # f32 -> 8, bf16 -> 16, int8/fp8 -> 32
    if r < q:
        tr = r                       # full-extent block (only legal sub-quantum choice)
    else:
        tr = min(256, _round_up((r + 1) // 2, q))
    lane_cap = max(128, (tile_budget_bytes // (tr * itemsize)) // 128 * 128)
    thw = hw if hw <= lane_cap else lane_cap
    return tr, thw


def _stats_kernel(x_ref, out_ref, mean_acc, m2_acc, *, hw, thw):
    """Streaming per-row mean / M2 over the HW (lane) axis.

    Running mean / M2 live in f32 scratch; the (TR, 2) output block is
    resident across the reduction axis and written once at the last chunk
    as [mean, std].
    """
    k = pl.program_id(1)

    @pl.when(k == 0)
    def _():
        mean_acc[...] = jnp.zeros_like(mean_acc)
        m2_acc[...] = jnp.zeros_like(m2_acc)

    x = x_ref[...].astype(jnp.float32)                       # (TR, THW)

    if hw % thw:
        # Ragged lane tail: only the last chunk is partial.  Mask the
        # out-of-bounds lanes (contents are unspecified, possibly NaN) and
        # use the per-chunk valid count in the Chan merge.
        valid = hw - k * thw                                  # scalar, traced
        lane = jax.lax.broadcasted_iota(jnp.int32, x.shape, 1)
        mask = lane < valid
        x = jnp.where(mask, x, 0.0)
        nb = jnp.minimum(jnp.float32(thw), valid.astype(jnp.float32))
    else:
        mask = None
        nb = jnp.float32(thw)

    mean_b = jnp.sum(x, axis=-1, keepdims=True) / nb          # (TR, 1)
    d = x - mean_b
    if mask is not None:
        d = jnp.where(mask, d, 0.0)
    m2_b = jnp.sum(d * d, axis=-1, keepdims=True)             # (TR, 1)

    # All previous chunks are full, so the running count is exact.
    na = k.astype(jnp.float32) * jnp.float32(thw)
    n = na + nb
    delta = mean_b - mean_acc[...]
    mean_acc[...] = mean_acc[...] + delta * (nb / n)
    m2_acc[...] = m2_acc[...] + m2_b + delta * delta * (na * nb / n)

    @pl.when(k == pl.num_programs(1) - 1)
    def _():
        # torch.std default is unbiased (divide by N-1); HW == 1 gives NaN,
        # which matches torch.
        std = jnp.sqrt(m2_acc[...] / jnp.float32(hw - 1))
        out_ref[...] = jnp.concatenate([mean_acc[...], std], axis=-1)


def _scale_kernel(x_ref, z_ref, o_ref):
    # z_ref: (TR, 1) pre-sigmoid gate logits.  Sigmoid runs on the EUP, which
    # has slack in this HBM-bandwidth-bound elementwise pass.
    g = jax.nn.sigmoid(z_ref[...].astype(jnp.float32)).astype(x_ref.dtype)
    o_ref[...] = (x_ref[...] * g).astype(o_ref.dtype)


@jax.jit
def srm_layer(x, cfc_w, bn_gamma, bn_beta, eps=1e-5):
    b, c, h, w = x.shape
    hw = h * w
    r = b * c
    x2 = x.reshape(r, hw)
    # TODO(synk): for the small-HW regime (hw < 128, e.g. 7x7/14x14 maps) a
    # lane-dense layout with C on the lane axis would avoid masked partial
    # stores; not implemented here.

    budget, vmem_limit = _vmem_budget_and_limit()
    tr, thw = _pick_tiles(r, hw, jnp.dtype(x.dtype).itemsize, budget)
    grid_rows = pl.cdiv(r, tr)
    grid_hw = pl.cdiv(hw, thw)

    # ---- Pallas kernel 1: per-(b, c) spatial mean / std (streamed over HW) ----
    stats = pl.pallas_call(
        functools.partial(_stats_kernel, hw=hw, thw=thw),
        out_shape=jax.ShapeDtypeStruct((r, 2), jnp.float32),
        grid=(grid_rows, grid_hw),
        in_specs=[pl.BlockSpec((tr, thw), lambda i, k: (i, k))],
        out_specs=pl.BlockSpec((tr, 2), lambda i, k: (i, 0)),
        scratch_shapes=[pltpu.VMEM((tr, 1), jnp.float32),
                        pltpu.VMEM((tr, 1), jnp.float32)],
        compiler_params=pltpu.CompilerParams(
            dimension_semantics=("parallel", "arbitrary"),
            vmem_limit_bytes=vmem_limit),
    )(x2)

    mean = stats[:, 0].reshape(b, c)
    std = stats[:, 1].reshape(b, c)

    # ---- glue: depthwise Conv1d(kernel=2, groups=C, no bias) on u=[mean, std] ----
    # cfc_w has shape (C, 1, 2); output length 1: z[b,c] = w0[c]*mean + w1[c]*std
    w0 = cfc_w[:, 0, 0]
    w1 = cfc_w[:, 0, 1]
    z = w0[None, :] * mean + w1[None, :] * std               # (B, C)

    # ---- glue: BatchNorm1d in training mode (batch statistics, biased var) ----
    # TODO(synk): the running-stats update of BatchNorm is a training side
    # effect and does not affect the forward output; it is not reproduced.
    bm = jnp.mean(z, axis=0, keepdims=True)
    bv = jnp.mean((z - bm) ** 2, axis=0, keepdims=True)
    z = (z - bm) * jax.lax.rsqrt(bv + eps) * bn_gamma[None, :] + bn_beta[None, :]
    z_rows = z.reshape(r, 1).astype(jnp.float32)

    # ---- Pallas kernel 2: sigmoid gate + broadcast multiply, tiled ----
    # NOTE: input_output_aliases={0: 0} (donating x2) would cut the HBM
    # footprint, but only helps when the caller donates x; omitted here since
    # the test re-reads x for the reference check.
    out = pl.pallas_call(
        _scale_kernel,
        out_shape=jax.ShapeDtypeStruct((r, hw), x.dtype),
        grid=(grid_rows, grid_hw),
        in_specs=[pl.BlockSpec((tr, thw), lambda i, k: (i, k)),
                  pl.BlockSpec((tr, 1), lambda i, k: (i, 0))],
        out_specs=pl.BlockSpec((tr, thw), lambda i, k: (i, k)),
        compiler_params=pltpu.CompilerParams(
            dimension_semantics=("parallel", "parallel"),
            vmem_limit_bytes=vmem_limit),
    )(x2, z_rows)

    return out.reshape(b, c, h, w)


def _srm_reference(x, cfc_w, bn_gamma, bn_beta, eps=1e-5):
    """Pure-JAX reference mirroring the PyTorch forward (train-mode BN)."""
    b, c, h, w = x.shape
    xf = x.reshape(b, c, -1).astype(jnp.float32)
    mean = jnp.mean(xf, axis=-1)
    std = jnp.std(xf, axis=-1, ddof=1)
    z = cfc_w[:, 0, 0][None, :] * mean + cfc_w[:, 0, 1][None, :] * std
    bm = jnp.mean(z, axis=0, keepdims=True)
    bv = jnp.mean((z - bm) ** 2, axis=0, keepdims=True)
    z = (z - bm) / jnp.sqrt(bv + eps) * bn_gamma[None, :] + bn_beta[None, :]
    g = jax.nn.sigmoid(z).reshape(b, c, 1, 1)
    return x * g


if __name__ == "__main__":
    B, C, H, W = 2, 4, 16, 16

    key = jax.random.PRNGKey(0)
    kx, kw, kg, kb = jax.random.split(key, 4)

    x = jax.random.normal(kx, (B, C, H, W), dtype=jnp.float32)
    # nn.Conv1d(C, C, kernel_size=2, groups=C, bias=False) -> weight (C, 1, 2)
    cfc_w = jax.random.normal(kw, (C, 1, 2), dtype=jnp.float32) * 0.5
    # nn.BatchNorm1d(C) affine params (deterministic, non-trivial)
    bn_gamma = 1.0 + 0.1 * jax.random.normal(kg, (C,), dtype=jnp.float32)
    bn_beta = 0.1 * jax.random.normal(kb, (C,), dtype=jnp.float32)

    out = jax.block_until_ready(srm_layer(x, cfc_w, bn_gamma, bn_beta))

    ref = _srm_reference(x, cfc_w, bn_gamma, bn_beta)
    assert out.shape == (B, C, H, W)
    assert jnp.allclose(out, ref, atol=1e-5, rtol=1e-5), "mismatch vs reference"

    print("KERNEL_OK")
</pallas_src>

<mosaic_0001>
module attributes {stable_mosaic.version = 11 : i64} {
  func.func @_stats_kernel(%arg0: i32, %arg1: i32, %arg2: memref<8x256xf32, #tpu.memory_space<vmem>>, %arg3: memref<8x2xf32, #tpu.memory_space<vmem>>, %arg4: memref<8x1xf32, #tpu.memory_space<vmem>>, %arg5: memref<8x1xf32, #tpu.memory_space<vmem>>) attributes {dimension_semantics = [#tpu.dimension_semantics<parallel>, #tpu.dimension_semantics<arbitrary>], iteration_bounds = array<i64: 1, 1>, scalar_prefetch = 0 : i64, scratch_operands = 2 : i64, tpu.core_type = #tpu.core_type<tc>, window_params = [{transform_indices = @transform_0, window_bounds = array<i64: 8, 256>}, {transform_indices = @transform_1, window_bounds = array<i64: 8, 2>}]} {
    %c0_i32 = arith.constant 0 : i32
    %0 = arith.cmpi eq, %arg1, %c0_i32 : i32
    %1 = arith.extui %0 : i1 to i32
    %c0_i32_0 = arith.constant 0 : i32
    %2 = arith.cmpi ne, %1, %c0_i32_0 : i32
    scf.if %2 {
      %cst_20 = arith.constant 0.000000e+00 : f32
      %36 = vector.broadcast %cst_20 : f32 to vector<8x1xf32>
      %c0_21 = arith.constant 0 : index
      %c0_22 = arith.constant 0 : index
      %37 = vector.load %arg4[%c0_21, %c0_22] : memref<8x1xf32, #tpu.memory_space<vmem>>, vector<8x1xf32>
      tpu.vector_store %arg4[%c0_21, %c0_22], %36 {strides = array<i32>} : memref<8x1xf32, #tpu.memory_space<vmem>>, vector<8x1xf32>,
      %cst_23 = arith.constant 0.000000e+00 : f32
      %38 = vector.broadcast %cst_23 : f32 to vector<8x1xf32>
      %c0_24 = arith.constant 0 : index
      %c0_25 = arith.constant 0 : index
      %39 = vector.load %arg5[%c0_24, %c0_25] : memref<8x1xf32, #tpu.memory_space<vmem>>, vector<8x1xf32>
      tpu.vector_store %arg5[%c0_24, %c0_25], %38 {strides = array<i32>} : memref<8x1xf32, #tpu.memory_space<vmem>>, vector<8x1xf32>,
    } else {
    }
    %c0 = arith.constant 0 : index
    %c0_1 = arith.constant 0 : index
    %3 = vector.load %arg2[%c0, %c0_1] : memref<8x256xf32, #tpu.memory_space<vmem>>, vector<8x256xf32>
    %cst = arith.constant dense<0.000000e+00> : vector<8xf32>
    %4 = vector.multi_reduction <add>, %3, %cst [1] : vector<8x256xf32> to vector<8xf32>
    %5 = vector.shape_cast %4 : vector<8xf32> to vector<8x1xf32>
    %cst_2 = arith.constant 2.560000e+02 : f32
    %6 = vector.broadcast %cst_2 : f32 to vector<8x1xf32>
    %7 = arith.divf %5, %6 : vector<8x1xf32>
    %8 = vector.broadcast %7 : vector<8x1xf32> to vector<8x256xf32>
    %9 = arith.subf %3, %8 : vector<8x256xf32>
    %10 = arith.mulf %9, %9 : vector<8x256xf32>
    %cst_3 = arith.constant dense<0.000000e+00> : vector<8xf32>
    %11 = vector.multi_reduction <add>, %10, %cst_3 [1] : vector<8x256xf32> to vector<8xf32>
    %12 = vector.shape_cast %11 : vector<8xf32> to vector<8x1xf32>
    %13 = arith.sitofp %arg1 : i32 to f32
    %cst_4 = arith.constant 2.560000e+02 : f32
    %14 = arith.mulf %13, %cst_4 : f32
    %cst_5 = arith.constant 2.560000e+02 : f32
    %15 = arith.addf %14, %cst_5 : f32
    %c0_6 = arith.constant 0 : index
    %c0_7 = arith.constant 0 : index
    %16 = vector.load %arg4[%c0_6, %c0_7] : memref<8x1xf32, #tpu.memory_space<vmem>>, vector<8x1xf32>
    %17 = arith.subf %7, %16 : vector<8x1xf32>
    %c0_8 = arith.constant 0 : index
    %c0_9 = arith.constant 0 : index
    %18 = vector.load %arg4[%c0_8, %c0_9] : memref<8x1xf32, #tpu.memory_space<vmem>>, vector<8x1xf32>
    %cst_10 = arith.constant 2.560000e+02 : f32
    %19 = arith.divf %cst_10, %15 : f32
    %20 = vector.broadcast %19 : f32 to vector<8x1xf32>
    %21 = arith.mulf %17, %20 : vector<8x1xf32>
    %22 = arith.addf %18, %21 : vector<8x1xf32>
    %c0_11 = arith.constant 0 : index
    %c0_12 = arith.constant 0 : index
    %23 = vector.load %arg4[%c0_11, %c0_12] : memref<8x1xf32, #tpu.memory_space<vmem>>, vector<8x1xf32>
    tpu.vector_store %arg4[%c0_11, %c0_12], %22 {strides = array<i32>} : memref<8x1xf32, #tpu.memory_space<vmem>>, vector<8x1xf32>,
    %c0_13 = arith.constant 0 : index
    %c0_14 = arith.constant 0 : index
    %24 = vector.load %arg5[%c0_13, %c0_14] : memref<8x1xf32, #tpu.memory_space<vmem>>, vector<8x1xf32>
    %25 = arith.addf %24, %12 : vector<8x1xf32>
    %26 = arith.mulf %17, %17 : vector<8x1xf32>
    %cst_15 = arith.constant 2.560000e+02 : f32
    %27 = arith.mulf %14, %cst_15 : f32
    %28 = arith.divf %27, %15 : f32
    %29 = vector.broadcast %28 : f32 to vector<8x1xf32>
    %30 = arith.mulf %26, %29 : vector<8x1xf32>
    %31 = arith.addf %25, %30 : vector<8x1xf32>
    %c0_16 = arith.constant 0 : index
    %c0_17 = arith.constant 0 : index
    %32 = vector.load %arg5[%c0_16, %c0_17] : memref<8x1xf32, #tpu.memory_space<vmem>>, vector<8x1xf32>
    tpu.vector_store %arg5[%c0_16, %c0_17], %31 {strides = array<i32>} : memref<8x1xf32, #tpu.memory_space<vmem>>, vector<8x1xf32>,
    %c0_i32_18 = arith.constant 0 : i32
    %33 = arith.cmpi eq, %arg1, %c0_i32_18 : i32
    %34 = arith.extui %33 : i1 to i32
    %c0_i32_19 = arith.constant 0 : i32
    %35 = arith.cmpi ne, %34, %c0_i32_19 : i32
    scf.if %35 {
      %c0_20 = arith.constant 0 : index
      %c0_21 = arith.constant 0 : index
      %36 = vector.load %arg5[%c0_20, %c0_21] : memref<8x1xf32, #tpu.memory_space<vmem>>, vector<8x1xf32>
      %cst_22 = arith.constant 2.550000e+02 : f32
      %37 = vector.broadcast %cst_22 : f32 to vector<8x1xf32>
      %38 = arith.divf %36, %37 : vector<8x1xf32>
      %39 = math.sqrt %38 : vector<8x1xf32>
      %c0_23 = arith.constant 0 : index
      %c0_24 = arith.constant 0 : index
      %40 = vector.load %arg4[%c0_23, %c0_24] : memref<8x1xf32, #tpu.memory_space<vmem>>, vector<8x1xf32>
      %41 = tpu.concatenate %40, %39 in 1 : vector<8x1xf32>, vector<8x1xf32> -> vector<8x2xf32>
      %c0_25 = arith.constant 0 : index
      %c0_26 = arith.constant 0 : index
      %42 = vector.load %arg3[%c0_25, %c0_26] : memref<8x2xf32, #tpu.memory_space<vmem>>, vector<8x2xf32>
      tpu.vector_store %arg3[%c0_25, %c0_26], %41 {strides = array<i32>} : memref<8x2xf32, #tpu.memory_space<vmem>>, vector<8x2xf32>,
    } else {
    }
    return
  }
  func.func @transform_0(%arg0: i32, %arg1: i32) -> (i32, i32) {
    %c0_i32 = arith.constant 0 : i32
    return %arg0, %arg1 : i32, i32
  }
  func.func @transform_1(%arg0: i32, %arg1: i32) -> (i32, i32) {
    %c0_i32 = arith.constant 0 : i32
    %c0_i32_0 = arith.constant 0 : i32
    return %arg0, %c0_i32 : i32, i32
  }
}

module attributes {stable_mosaic.version = 11 : i64} {
  func.func @_scale_kernel(%arg0: i32, %arg1: i32, %arg2: memref<8x256xf32, #tpu.memory_space<vmem>>, %arg3: memref<8x1xf32, #tpu.memory_space<vmem>>, %arg4: memref<8x256xf32, #tpu.memory_space<vmem>>) attributes {dimension_semantics = [#tpu.dimension_semantics<parallel>, #tpu.dimension_semantics<parallel>], iteration_bounds = array<i64: 1, 1>, scalar_prefetch = 0 : i64, scratch_operands = 0 : i64, tpu.core_type = #tpu.core_type<tc>, window_params = [{transform_indices = @transform_0, window_bounds = array<i64: 8, 256>}, {transform_indices = @transform_1, window_bounds = array<i64: 8, 1>}, {transform_indices = @transform_2, window_bounds = array<i64: 8, 256>}]} {
    %c0 = arith.constant 0 : index
    %c0_0 = arith.constant 0 : index
    %0 = vector.load %arg3[%c0, %c0_0] : memref<8x1xf32, #tpu.memory_space<vmem>>, vector<8x1xf32>
    %1 = arith.negf %0 : vector<8x1xf32>
    %2 = math.exp %1 : vector<8x1xf32>
    %cst = arith.constant 1.000000e+00 : f32
    %3 = vector.broadcast %cst : f32 to vector<8x1xf32>
    %4 = arith.addf %3, %2 : vector<8x1xf32>
    %5 = arith.divf %3, %4 : vector<8x1xf32>
    %c0_1 = arith.constant 0 : index
    %c0_2 = arith.constant 0 : index
    %6 = vector.load %arg2[%c0_1, %c0_2] : memref<8x256xf32, #tpu.memory_space<vmem>>, vector<8x256xf32>
    %7 = vector.broadcast %5 : vector<8x1xf32> to vector<8x256xf32>
    %8 = arith.mulf %6, %7 : vector<8x256xf32>
    %c0_3 = arith.constant 0 : index
    %c0_4 = arith.constant 0 : index
    %9 = vector.load %arg4[%c0_3, %c0_4] : memref<8x256xf32, #tpu.memory_space<vmem>>, vector<8x256xf32>
    tpu.vector_store %arg4[%c0_3, %c0_4], %8 {strides = array<i32>} : memref<8x256xf32, #tpu.memory_space<vmem>>, vector<8x256xf32>,
    return
  }
  func.func @transform_0(%arg0: i32, %arg1: i32) -> (i32, i32) {
    %c0_i32 = arith.constant 0 : i32
    return %arg0, %arg1 : i32, i32
  }
  func.func @transform_1(%arg0: i32, %arg1: i32) -> (i32, i32) {
    %c0_i32 = arith.constant 0 : i32
    %c0_i32_0 = arith.constant 0 : i32
    return %arg0, %c0_i32 : i32, i32
  }
  func.func @transform_2(%arg0: i32, %arg1: i32) -> (i32, i32) {
    %c0_i32 = arith.constant 0 : i32
    return %arg0, %arg1 : i32, i32
  }
}

</mosaic_0001>

<bundles_post_ra>
// kernel: squeeze.4
= control target key start
LH: loop header
LB: loop body
LE: loop exit
PB: predicated region body
PF: predicated region fallthrough
CT: control target
= control target key end

     0   :  { %vm7_vm0 = vcmask 31744   ;;  %s39_s0 = inlined_call_operand.vmem [shape: f32[8], index: 0, kind: input, shape index: {}]   ;;  %s40_s1 = inlined_call_operand.vmem [shape: f32[2,4], index: 1, kind: output, shape index: {}]  }
   0x1   :  { %v4_v0 = vld [vmem:[%s39_s0] sm:$0x1]  ;;  %s22_s0 = smov 124  }
   0x2   :  { %5 = vst [vmem:[#allocation1] sm:$0x1] %v4_v0 }
   0x9   :  { %v9_v1 = vld [vmem:[#allocation1] sm:$0x1]  }
   0xa   :  { %v6_v2 = vld [vmem:[#allocation1] sm:$0x1]   ;;  %10 = vrot.lane.b32.xlu0 %v9_v1, %s22_s0 }
   0xb   :  { %8 = vst.msk [vmem:[#allocation0] sm:$0x1] %vm7_vm0, %v6_v2  }
  0x7c   :  { %v11_v3 = vpop.permute.xlu0 %10  }
  0x7d   :  { %14 = vst.msk [vmem:[#allocation0 + $0x1] sm:$0x1] %vm7_vm0, %v11_v3  }
  0x84   :  { %v18_v4 = vld [vmem:[#allocation0] sm:$0x3] }
  0x85   :  { %20 = vst [vmem:[%s40_s1] sm:$0x3] %v18_v4 }

// kernel: srm_layer.3
= control target key start
LH: loop header
LB: loop body
LE: loop exit
PB: predicated region body
PF: predicated region fallthrough
CT: control target
= control target key end

     0   :  { %7 = vsyncpa [#allocation3], 0  ;;  %s207_s0 = inlined_call_operand.hbm [shape: f32[8,256], index: 0, kind: input, shape index: {}]   ;;  %s208_s1 = inlined_call_operand.hbm [shape: f32[8,1], index: 1, kind: input, shape index: {}]   ;;  %s209_s2 = inlined_call_operand.hbm [shape: f32[8,256], index: 2, kind: output, shape index: {}]  }
   0x1   :  { %8 = vsyncpa [#allocation6], 0 }
   0x2   :  { %9 = vsyncpa [#allocation4], 0  ;;  %s152_s9 = smov [#allocation2]   ;;  %s153_s11 = smov [#allocation5]  }
   0x3   :  { %s16_s10 = sshll.u32 %s152_s9, 4  ;;  %s26_s12 = sshll.u32 %s153_s11, 4  ;;  %s17_s10 = int_to_ptr.vmem [resolvable:$true] %s16_s10  ;;  %s27_s12 = int_to_ptr.vmem [resolvable:$true] %s26_s12 }
   0x4   :  { %s80_s15 = scalar_lea.hbm %s207_s0, 256 }
   0x5   :  { %p81_p0 = scmp.ne.s32.totalorder %s207_s0, %s80_s15  ;;  %p84_p1 = scmp.lt.u32.totalorder %s80_s15, %s207_s0 }
   0x7   :  { %p86_p2 = pnand %p84_p1, %p81_p0 }
   0x9   :  { %89 = shalt.err (!%p86_p2)
}
   0xa   :  { %s90_s20 = scalar_lea.vmem %s17_s10, 256  ;;  %p95_p4 = scmp.lt.s32.totalorder %s17_s10, %s17_s10 }
   0xb   :  { %p91_p3 = scmp.ne.s32.totalorder %s17_s10, %s90_s20  ;;  %p96_p5 = scmp.lt.s32.totalorder %s90_s20, %s90_s20 }
   0xd   :  { %p97_p6 = por %p96_p5, %p95_p4 }
   0xf   :  { %p98_p7 = pnand %p97_p6, %p91_p3 }
  0x11   :  { %101 = shalt.err (!%p98_p7)
}
  0x12   :  { %19 = dma.hbm_to_vmem [thread:$0]  %s207_s0, 256, %s17_s10, [#allocation3]  }
  0x13   :  { %s102_s25 = scalar_lea.hbm %s208_s1, 128 }
  0x14   :  { %p103_p8 = scmp.ne.s32.totalorder %s208_s1, %s102_s25  ;;  %p106_p9 = scmp.lt.u32.totalorder %s102_s25, %s208_s1 }
  0x16   :  { %p108_p10 = pnand %p106_p9, %p103_p8 }
  0x18   :  { %111 = shalt.err (!%p108_p10)
}
  0x19   :  { %s112_s30 = scalar_lea.vmem %s27_s12, 128  ;;  %p117_p12 = scmp.lt.s32.totalorder %s27_s12, %s27_s12 }
  0x1a   :  { %p113_p11 = scmp.ne.s32.totalorder %s27_s12, %s112_s30  ;;  %p118_p13 = scmp.lt.s32.totalorder %s112_s30, %s112_s30 }
  0x1c   :  { %p119_p0 = por %p118_p13, %p117_p12 }
  0x1e   :  { %p120_p1 = pnand %p119_p0, %p113_p11 }
  0x20   :  { %123 = shalt.err (!%p120_p1)
}
  0x21   :  { %29 = dma.hbm_to_vmem [thread:$0]  %s208_s1, 128, %s27_s12, [#allocation6]  }
  0x22   :  { %146 = dma.done.wait [#allocation3], 256  }
  0x23   :  { %147 = vsyncadd [#allocation3], 4294967040 }
  0x24   :  { %148 = dma.done.wait [#allocation6], 128  }
  0x25   :  { %149 = vsyncadd [#allocation6], 4294967168  ;;  %v154_v0 = vmov 0   ;;  %v36_v1 = vld [vmem:[#allocation5] sm:$0xff]  ;;  %v43_v6 = vld [vmem:[#allocation2] sm:$0xff]  ;;  %s155_s4 = smov [#allocation7]  }
  0x26   :  { %75 = vset.pattern.permute.xlu0 %v154_v0  ;;  %v70_v2 = vmul.f32 -1.442695, %v36_v1  ;;  %v44_v7 = vld [vmem:[#allocation2 + $0x8] sm:$0xff]  ;;  %s60_s5 = sshll.u32 %s155_s4, 4  ;;  %s61_s5 = int_to_ptr.vmem [resolvable:$true] %s60_s5 }
  0x27   :  { %s124_s1 = scalar_lea.vmem %s61_s5, 256  ;;  %p129_p3 = scmp.lt.s32.totalorder %s61_s5, %s61_s5 }
  0x28   :  { %76 = vpow2.f32 %v70_v2  ;;  %p125_p2 = scmp.ne.s32.totalorder %s61_s5, %s124_s1  ;;  %p130_p4 = scmp.lt.s32.totalorder %s124_s1, %s124_s1 }
  0x2a   :  { %p131_p5 = por %p130_p4, %p129_p3 }
  0x2c   :  { %p132_p6 = pnand %p131_p5, %p125_p2 }
  0x32   :  { %v77_v3 = vpop.eup %76 }
  0x33   :  { %v40_v4 = vadd.f32 1.0, %v77_v3 }
  0x35   :  { %78 = vrcp.f32 %v40_v4 }
  0x3f   :  { %v79_v5 = vpop.eup %78 }
  0x40   :  { %47 = vperm.xlu0 %75, %v79_v5  }
  0xbf   :  { %v48_v8 = vpop.permute.xlu0 %47 }
  0xc0   :  { %v50_v9 = vmul.f32 %v48_v8, %v43_v6  ;;  %v51_v10 = vmul.f32 %v48_v8, %v44_v7 }
  0xc2   :  { %52 = vst [vmem:[#allocation7] sm:$0xff] %v50_v9  ;;  %53 = vst [vmem:[#allocation7 + $0x8] sm:$0xff] %v51_v10 }
  0xc3   :  { %135 = shalt.err (!%p132_p6)
}
  0xc4   :  { %s136_s8 = scalar_lea.hbm %s209_s2, 256 }
  0xc5   :  { %p137_p7 = scmp.ne.s32.totalorder %s209_s2, %s136_s8  ;;  %p140_p8 = scmp.lt.u32.totalorder %s136_s8, %s209_s2 }
  0xc7   :  { %p142_p9 = pnand %p140_p8, %p137_p7 }
  0xc9   :  { %145 = shalt.err (!%p142_p9)
}
  0xca   :  { %63 = dma.vmem_to_hbm [thread:$0]  %s61_s5, 256, %s209_s2, [#allocation4]  }
  0xcb   :  { %150 = dma.done.wait [#allocation4], 256  }
  0xcc   :  { %151 = vsyncadd [#allocation4], 4294967040 }
  0xcd   :  { %67 = vsyncpa [#allocation3], 1 }
  0xce   :  { %68 = vsyncpa [#allocation6], 1 }
  0xcf   :  { %69 = vsyncpa [#allocation4], 1 }

// kernel: srm_layer.2
= control target key start
LH: loop header
LB: loop body
LE: loop exit
PB: predicated region body
PF: predicated region fallthrough
CT: control target
= control target key end

     0   :  { %6 = vsyncpa [#allocation5], 0  ;;  %s201_s0 = inlined_call_operand.hbm [shape: f32[8,256], index: 0, kind: input, shape index: {}]   ;;  %s202_s1 = inlined_call_operand.hbm [shape: f32[8,2], index: 1, kind: output, shape index: {}]  }
   0x1   :  { %7 = vsyncpa [#allocation6], 0  ;;  %s158_s6 = smov [#allocation4]   ;;  %s110_s10 = scalar_lea.hbm %s201_s0, 256 }
   0x2   :  { %s14_s7 = sshll.u32 %s158_s6, 4  ;;  %p111_p0 = scmp.ne.s32.totalorder %s201_s0, %s110_s10  ;;  %s15_s7 = int_to_ptr.vmem [resolvable:$true] %s14_s7 }
   0x3   :  { %p114_p1 = scmp.lt.u32.totalorder %s110_s10, %s201_s0 }
   0x5   :  { %p116_p2 = pnand %p114_p1, %p111_p0 }
   0x7   :  { %119 = shalt.err (!%p116_p2)
}
   0x8   :  { %s120_s15 = scalar_lea.vmem %s15_s7, 256  ;;  %p125_p4 = scmp.lt.s32.totalorder %s15_s7, %s15_s7 }
   0x9   :  { %p121_p3 = scmp.ne.s32.totalorder %s15_s7, %s120_s15  ;;  %p126_p5 = scmp.lt.s32.totalorder %s120_s15, %s120_s15 }
   0xb   :  { %p127_p6 = por %p126_p5, %p125_p4 }
   0xd   :  { %p128_p7 = pnand %p127_p6, %p121_p3 }
   0xf   :  { %131 = shalt.err (!%p128_p7)
}
  0x10   :  { %17 = dma.hbm_to_vmem [thread:$0]  %s201_s0, 256, %s15_s7, [#allocation5]  }
  0x11   :  { %154 = dma.done.wait [#allocation5], 256  }
  0x12   :  { %155 = vsyncadd [#allocation5], 4294967040  ;;  %vm25_vm0 = vcmask 7168   ;;  %v159_v0 = vmov 0.0   ;;  %v28_v1 = vld [vmem:[#allocation4] sm:$0xff]  ;;  %v29_v2 = vld [vmem:[#allocation4 + $0x8] sm:$0xff] }
  0x13   :  { %26 = vst.msk [vmem:[#allocation2] sm:$0xff] %vm25_vm0, %v159_v0  ;;  %27 = vst.msk [vmem:[#allocation3] sm:$0xff] %vm25_vm0, %v159_v0  ;;  %v30_v3 = vadd.f32 %v29_v2, %v28_v1  ;;  %s160_s0 = smov 1   ;;  %s161_s18 = smov [#allocation7]   ;;  %vm87_vm3 = vcmask 15360  }
  0x14   :  { %s95_s19 = sshll.u32 %s161_s18, 4  ;;  %s96_s19 = int_to_ptr.vmem [resolvable:$true] %s95_s19 }
  0x15   :  { %31 = vadd.xlane.f32.xlu0 %v30_v3  ;;  %s132_s20 = scalar_lea.vmem %s96_s19, 128  ;;  %p137_p9 = scmp.lt.s32.totalorder %s96_s19, %s96_s19 }
  0x16   :  { %p133_p8 = scmp.ne.s32.totalorder %s96_s19, %s132_s20  ;;  %p138_p10 = scmp.lt.s32.totalorder %s132_s20, %s132_s20 }
  0x18   :  { %p139_p11 = por %p138_p10, %p137_p9 }
  0x1a   :  { %v45_v5 = vld [vmem:[#allocation2] sm:$0xff]  ;;  %v56_v15 = vld [vmem:[#allocation3] sm:$0xff]  ;;  %p140_p12 = pnand %p139_p11, %p133_p8 }
  0xa2   :  { %v32_v4 = vpop.xlane.xlu0 %31 }
  0xa3   :  { %v34_v6 = vmul.f32 0.00390625, %v32_v4 }
  0xa5   :  { %v46_v7 = vsub.f32 %v34_v6, %v45_v5  ;;  %v35_v8 = vsub.f32 %v28_v1, %v34_v6  ;;  %v36_v9 = vsub.f32 %v29_v2, %v34_v6 }
  0xa7   :  { %v53_v10 = vadd.f32 %v46_v7, %v45_v5  ;;  %v37_v11 = vmul.f32 %v35_v8, %v35_v8  ;;  %v38_v12 = vmul.f32 %v36_v9, %v36_v9  ;;  %v58_v14 = vmul.f32 %v46_v7, %v46_v7 }
  0xa9   :  { %55 = vst.msk [vmem:[#allocation2] sm:$0xff] %vm25_vm0, %v53_v10  ;;  %v39_v13 = vadd.f32 %v38_v12, %v37_v11  ;;  %v65_v18 = vmul.f32 0.0, %v58_v14 }
  0xab   :  { %40 = vadd.xlane.f32.xlu0 %v39_v13 }
  0xb0   :  { %v81_v28 = vld [vmem:[#allocation2] sm:$0xff] }
 0x138   :  { %v41_v16 = vpop.xlane.xlu0 %40 }
 0x139   :  { %v57_v17 = vadd.f32 %v56_v15, %v41_v16 }
 0x13b   :  { %v66_v19 = vadd.f32 %v65_v18, %v57_v17 }
 0x13d   :  { %67 = vst.msk [vmem:[#allocation3] sm:$0xff] %vm25_vm0, %v66_v19 }
 0x144   :  { %v71_v20 = vld [vmem:[#allocation3] sm:$0xff] }
 0x145   :  { %v73_v21 = vmul.f32 0.003921569, %v71_v20 }
 0x147   :  { %108 = vrsqrt.f32 %v73_v21  ;;  %vm76_vm1 = vcmp.eq.f32.partialorder %v73_v21, inf  ;;  %v79_v24 = vand.u32 2147483648, %v73_v21  ;;  %vm78_vm2 = vcmp.eq.f32.partialorder %v73_v21, 0.0 }
 0x151   :  { %v109_v22 = vpop.eup %108 }
 0x152   :  { %v75_v23 = vmul.f32 %v109_v22, %v73_v21 }
 0x154   :  { %v77_v25 = vsel %vm76_vm1, %v73_v21, %v75_v23 }
 0x155   :  { %v80_v26 = vsel %vm78_vm2, %v79_v24, %v77_v25 }
 0x156   :  { %83 = vrot.lane.b32.xlu1 %v80_v26, %s160_s0 }
 0x1c8   :  { %v84_v27 = vpop.permute.xlu1 %83 }
 0x1c9   :  { %v86_v29 = vsel %vm25_vm0, %v81_v28, %v84_v27 }
 0x1ca   :  { %88 = vst.msk [vmem:[#allocation7] sm:$0xff] %vm87_vm3, %v86_v29 }
 0x1cb   :  { %143 = shalt.err (!%p140_p12)
}
 0x1cc   :  { %s144_s23 = scalar_lea.hbm %s202_s1, 128 }
 0x1cd   :  { %p145_p13 = scmp.ne.s32.totalorder %s202_s1, %s144_s23  ;;  %p148_p0 = scmp.lt.u32.totalorder %s144_s23, %s202_s1 }
 0x1cf   :  { %p150_p1 = pnand %p148_p0, %p145_p13 }
 0x1d1   :  { %153 = shalt.err (!%p150_p1)
}
 0x1d2   :  { %98 = dma.vmem_to_hbm [thread:$0]  %s96_s19, 128, %s202_s1, [#allocation6]  }
 0x1d3   :  { %156 = dma.done.wait [#allocation6], 128  }
 0x1d4   :  { %157 = vsyncadd [#allocation6], 4294967168 }
 0x1d5   :  { %102 = vsyncpa [#allocation5], 1 }
 0x1d6   :  { %103 = vsyncpa [#allocation6], 1 }

</bundles_post_ra>
